<compile_context>
chip_gen: v6e
topology: v6e:2x2x1
jax: 0.10.0
libtpu: 0.0.40
codegen_flags: <defaults>
</compile_context>

<pallas_src>
import math

import jax
import jax.numpy as jnp
import numpy as np
from jax.experimental import pallas as pl
from jax.experimental.pallas import tpu as pltpu

LOWER_BOUND = 1e-4  # default GreaterThan(1e-4) constraint in __init__


def _noise_diag_kernel(raw_ref, out_ref):
    # raw_ref : (row_tile, 1)        one column of raw_noise per output row
    # out_ref : (row_tile, tile_n)   lane-dense slab of the constant diagonal
    raw = raw_ref[...].astype(jnp.float32)
    # stable softplus(raw) + lower_bound  ==  GreaterThan(1e-4).transform(raw)
    noise = jnp.maximum(raw, 0.0) + jnp.log1p(jnp.exp(-jnp.abs(raw))) + LOWER_BOUND
    out_ref[...] = jnp.broadcast_to(noise, out_ref.shape).astype(out_ref.dtype)


def homoskedastic_noise_diag(raw_noise, shape, *, tile_n=1024, max_row_tile=64,
                             out_dtype=None):
    """Materialize the diagonal of ConstantDiagLinearOperator(noise_diag, n)."""
    *in_batch, n = tuple(int(s) for s in shape)
    noise_batch = raw_noise.shape[:-1]
    num_tasks = raw_noise.shape[-1]
    out_dtype = raw_noise.dtype if out_dtype is None else out_dtype

    bcast_batch = jnp.broadcast_shapes(tuple(noise_batch), tuple(in_batch))
    b_flat = math.prod(bcast_batch) if bcast_batch else 1
    rows = b_flat * num_tasks

    raw_b = jnp.broadcast_to(raw_noise, bcast_batch + (num_tasks,))
    raw_rows = raw_b.reshape(rows, 1)

    # Sublane fold: each output row is a constant, so when rows < 8 we can fold
    # a factor of n into the sublane axis (row-major reshape back is exact) to
    # get full-sublane, unmasked stores.
    fold = 1
    if rows < 8:
        for f in (8, 4, 2):
            if n % f == 0:
                fold = f
                break
    rows_k = rows * fold
    n_k = n // fold
    raw_k = jnp.repeat(raw_rows, fold, axis=0) if fold > 1 else raw_rows

    # Lane tile: large multiple of 128, or the full (possibly ragged) extent.
    tn = tile_n if n_k >= tile_n else n_k
    # Row tile: full extent if small, else a multiple of 8 capped for vreg /
    # VMEM pressure (block <= max_row_tile * tile_n f32 << v7x scoped VMEM).
    tr = rows_k if rows_k <= max_row_tile else max_row_tile

    grid = (pl.cdiv(rows_k, tr), pl.cdiv(n_k, tn))

    out = pl.pallas_call(
        _noise_diag_kernel,
        out_shape=jax.ShapeDtypeStruct((rows_k, n_k), out_dtype),
        grid_spec=pltpu.PrefetchScalarGridSpec(
            num_scalar_prefetch=0,
            grid=grid,
            in_specs=[pl.BlockSpec((tr, 1), lambda i, j: (i, 0))],
            out_specs=pl.BlockSpec((tr, tn), lambda i, j: (i, j)),
        ),
        compiler_params=pltpu.CompilerParams(
            dimension_semantics=("parallel", "parallel")),
    )(raw_k)

    # (rows * fold, n // fold) row-major  ==  (rows, n) row-major.
    diag = out.reshape(*bcast_batch, num_tasks, n)
    if num_tasks == 1:
        diag = diag.reshape(*bcast_batch, n)
    return diag


def homoskedastic_noise_forward(raw_noise, *params, shape=None, noise=None):
    """Mirrors _HomoskedasticNoiseBase.forward, returning the diagonal values
    of the DiagLinearOperator / ConstantDiagLinearOperator it would build."""
    if noise is not None:
        # DiagLinearOperator(noise): the diagonal is `noise` itself.
        return noise
    if shape is None:
        p = params[0]
        shape = p.shape if p.ndim == 1 else p.shape[:-1]
    return homoskedastic_noise_diag(raw_noise, shape)


if __name__ == "__main__":
    # --- case 1: batched noise (batch_shape=(2,)), batched input, num_tasks=1 ---
    batch_shape = (2,)
    num_tasks = 1
    raw_noise = jax.random.normal(jax.random.PRNGKey(0),
                                  (*batch_shape, num_tasks), dtype=jnp.float32)
    x = jax.random.normal(jax.random.PRNGKey(1), (2, 256, 32), dtype=jnp.float32)

    diag = jax.block_until_ready(homoskedastic_noise_forward(raw_noise, x))
    assert diag.shape == (2, 256), diag.shape
    expected = jnp.broadcast_to(jax.nn.softplus(raw_noise) + LOWER_BOUND, (2, 256))
    np.testing.assert_allclose(np.asarray(diag), np.asarray(expected),
                               rtol=1e-6, atol=1e-6)

    # --- case 2: non-batched noise, batched input, multitask (num_tasks=2) ---
    raw_noise_mt = jax.random.normal(jax.random.PRNGKey(2), (2,), dtype=jnp.float32)
    diag_mt = jax.block_until_ready(homoskedastic_noise_forward(raw_noise_mt, x))
    assert diag_mt.shape == (2, 2, 256), diag_mt.shape
    noise_mt = jax.nn.softplus(raw_noise_mt) + LOWER_BOUND
    expected_mt = jnp.broadcast_to(noise_mt[None, :, None], (2, 2, 256))
    np.testing.assert_allclose(np.asarray(diag_mt), np.asarray(expected_mt),
                               rtol=1e-6, atol=1e-6)

    # --- case 3: non-batched noise, 1-D input, exercises multi-tile + ragged tail ---
    raw_noise_1 = jax.random.normal(jax.random.PRNGKey(3), (1,), dtype=jnp.float32)
    x1d = jnp.zeros((9344,), dtype=jnp.float32)  # n=9344 -> folded n_k=1168, 2 lane tiles
    diag_1 = jax.block_until_ready(homoskedastic_noise_forward(raw_noise_1, x1d))
    assert diag_1.shape == (9344,), diag_1.shape
    expected_1 = jnp.broadcast_to(jax.nn.softplus(raw_noise_1) + LOWER_BOUND, (9344,))
    np.testing.assert_allclose(np.asarray(diag_1), np.asarray(expected_1),
                               rtol=1e-6, atol=1e-6)

    print("KERNEL_OK")
</pallas_src>

<mosaic_0001>
module attributes {stable_mosaic.version = 11 : i64} {
  func.func @_noise_diag_kernel(%arg0: i32, %arg1: i32, %arg2: memref<16x1xf32, #tpu.memory_space<vmem>>, %arg3: memref<16x32xf32, #tpu.memory_space<vmem>>) attributes {dimension_semantics = [#tpu.dimension_semantics<parallel>, #tpu.dimension_semantics<parallel>], iteration_bounds = array<i64: 1, 1>, scalar_prefetch = 0 : i64, scratch_operands = 0 : i64, tpu.core_type = #tpu.core_type<tc>, window_params = [{transform_indices = @transform_0, window_bounds = array<i64: 16, 1>}, {transform_indices = @transform_1, window_bounds = array<i64: 16, 32>}]} {
    %c0 = arith.constant 0 : index
    %c0_0 = arith.constant 0 : index
    %0 = vector.load %arg2[%c0, %c0_0] : memref<16x1xf32, #tpu.memory_space<vmem>>, vector<16x1xf32>
    %cst = arith.constant 0.000000e+00 : f32
    %1 = vector.broadcast %cst : f32 to vector<16x1xf32>
    %2 = arith.maximumf %0, %1 : vector<16x1xf32>
    %3 = math.absf %0 : vector<16x1xf32>
    %cst_1 = arith.constant 0.000000e+00 : f32
    %4 = vector.broadcast %cst_1 : f32 to vector<16x1xf32>
    %5 = arith.subf %4, %3 : vector<16x1xf32>
    %6 = math.exp %5 : vector<16x1xf32>
    %7 = math.log1p %6 : vector<16x1xf32>
    %8 = arith.addf %2, %7 : vector<16x1xf32>
    %cst_2 = arith.constant 9.99999974E-5 : f32
    %9 = vector.broadcast %cst_2 : f32 to vector<16x1xf32>
    %10 = arith.addf %8, %9 : vector<16x1xf32>
    %11 = vector.shape_cast %10 : vector<16x1xf32> to vector<16x1xf32>
    %12 = vector.broadcast %11 : vector<16x1xf32> to vector<16x32xf32>
    %c0_3 = arith.constant 0 : index
    %c0_4 = arith.constant 0 : index
    %13 = vector.load %arg3[%c0_3, %c0_4] : memref<16x32xf32, #tpu.memory_space<vmem>>, vector<16x32xf32>
    tpu.vector_store %arg3[%c0_3, %c0_4], %12 {strides = array<i32>} : memref<16x32xf32, #tpu.memory_space<vmem>>, vector<16x32xf32>,
    return
  }
  func.func @transform_0(%arg0: i32, %arg1: i32) -> (i32, i32) {
    %c0_i32 = arith.constant 0 : i32
    %c0_i32_0 = arith.constant 0 : i32
    return %arg0, %c0_i32 : i32, i32
  }
  func.func @transform_1(%arg0: i32, %arg1: i32) -> (i32, i32) {
    %c0_i32 = arith.constant 0 : i32
    return %arg0, %arg1 : i32, i32
  }
}

</mosaic_0001>

<bundles_post_ra>
// kernel: tpu_custom_call.1
= control target key start
LH: loop header
LB: loop body
LE: loop exit
PB: predicated region body
PF: predicated region fallthrough
CT: control target
= control target key end

     0   :  { %s130_s0 = inlined_call_operand.vmem [shape: f32[16,1], index: 0, kind: input, shape index: {}]   ;;  %s131_s1 = inlined_call_operand.hbm [shape: f32[16,32], index: 1, kind: output, shape index: {}]  }
   0x1   :  { %v9_v0 = vld [vmem:[%s130_s0] sm:$0xff]  ;;  %v10_v1 = vld [vmem:[%s130_s0 + $0x8] sm:$0xff] }
   0x2   :  { %6 = vsyncpa [#allocation3], 0  ;;  %v107_v2 = vmov 0   ;;  %v13_v3 = vand.u32 2147483647, %v9_v0  ;;  %v11_v21 = vmax.f32 %v9_v0, 0.0 }
   0x3   :  { %76 = vset.pattern.permute.xlu0 %v107_v2  ;;  %v14_v4 = vand.u32 2147483647, %v10_v1  ;;  %v12_v25 = vmax.f32 %v10_v1, 0.0  ;;  %vm53_vm2 = vcmask 261120   ;;  %s108_s0 = smov [#allocation2]  }
   0x4   :  { %v15_v5 = vsub.f32 0.0, %v13_v3  ;;  %s61_s10 = sshll.u32 %s108_s0, 4  ;;  %s62_s10 = int_to_ptr.vmem [resolvable:$true] %s61_s10 }
   0x5   :  { %v16_v6 = vsub.f32 0.0, %v14_v4  ;;  %s85_s11 = scalar_lea.vmem %s62_s10, 256  ;;  %p90_p1 = scmp.lt.s32.totalorder %s62_s10, %s62_s10 }
   0x6   :  { %v17_v7 = vmul.f32 1.442695, %v15_v5  ;;  %p86_p0 = scmp.ne.s32.totalorder %s62_s10, %s85_s11  ;;  %p91_p2 = scmp.lt.s32.totalorder %s85_s11, %s85_s11 }
   0x7   :  { %v19_v8 = vmul.f32 1.442695, %v16_v6 }
   0x8   :  { %77 = vpow2.f32 %v17_v7  ;;  %p92_p3 = por %p91_p2, %p90_p1 }
   0x9   :  { %79 = vpow2.f32 %v19_v8 }
   0xa   :  { %p93_p4 = pnand %p92_p3, %p86_p0 }
  0x15   :  { %v78_v9 = vpop.eup %77 }
  0x16   :  { %v80_v10 = vpop.eup %79  ;;  %v21_v11 = vadd.f32 1.0, %v78_v9  ;;  %v24_v13 = vmul.f32 -0.5, %v78_v9  ;;  %v27_v16 = vand.u32 2147483647, %v78_v9 }
  0x17   :  { %v30_v12 = vadd.f32 1.0, %v80_v10  ;;  %v33_v14 = vmul.f32 -0.5, %v80_v10  ;;  %v36_v18 = vand.u32 2147483647, %v80_v10 }
  0x18   :  { %81 = vlog2.f32 %v21_v11  ;;  %v25_v15 = vadd.f32 1.0, %v24_v13  ;;  %vm28_vm0 = vcmp.lt.f32.partialorder %v27_v16, 0.0004427343 }
  0x19   :  { %83 = vlog2.f32 %v30_v12  ;;  %v34_v17 = vadd.f32 1.0, %v33_v14  ;;  %vm37_vm1 = vcmp.lt.f32.partialorder %v36_v18, 0.0004427343 }
  0x1a   :  { %v26_v19 = vmul.f32 %v78_v9, %v25_v15 }
  0x1b   :  { %v35_v22 = vmul.f32 %v80_v10, %v34_v17 }
  0x25   :  { %v82_v20 = vpop.eup %81 }
  0x26   :  { %v84_v23 = vpop.eup %83  ;;  %v23_v24 = vmul.f32 0.6931472, %v82_v20 }
  0x27   :  { %v32_v26 = vmul.f32 0.6931472, %v84_v23 }
  0x28   :  { %v29_v27 = vsel %vm28_vm0, %v26_v19, %v23_v24 }
  0x29   :  { %v39_v28 = vadd.f32 %v29_v27, %v11_v21  ;;  %v38_v29 = vsel %vm37_vm1, %v35_v22, %v32_v26 }
  0x2a   :  { %v40_v30 = vadd.f32 %v38_v29, %v12_v25 }
  0x2b   :  { %v41_v31 = vadd.f32 0.0001, %v39_v28 }
  0x2c   :  { %v42_v32 = vadd.f32 0.0001, %v40_v30 }
  0x2d   :  { %45 = vperm.xlu0 %76, %v41_v31  }
  0x31   :  { %50 = vperm.xlu0 %76, %v42_v32  }
  0xa8   :  { %v46_v33 = vpop.permute.xlu0 %45 }
  0xa9   :  { %54 = vst.msk [vmem:[#allocation2] sm:$0xff] %vm53_vm2, %v46_v33 }
  0xac   :  { %v51_v34 = vpop.permute.xlu0 %50 }
  0xad   :  { %55 = vst.msk [vmem:[#allocation2 + $0x8] sm:$0xff] %vm53_vm2, %v51_v34 }
  0xae   :  { %96 = shalt.err (!%p93_p4)
}
  0xaf   :  { %s109_s12 = smov 128   ;;  %s110_s13 = smov 8  }
  0xb0   :  { %67 = dma.vmem_to_hbm [thread:$0]  %s62_s10, 256, %s131_s1, [#allocation3], %s109_s12, %s109_s12, %s110_s13  }
  0xb1   :  { %105 = dma.done.wait [#allocation3], 256  }
  0xb2   :  { %106 = vsyncadd [#allocation3], 4294967040 }
  0xb3   :  { %71 = vsyncpa [#allocation3], 1 }

</bundles_post_ra>
